<compile_context>
chip_gen: v7x
topology: tpu7x:2x2x1
jax: 0.10.0
libtpu: 0.0.40
codegen_flags: <defaults>
</compile_context>

<pallas_src>
import functools

import jax
import jax.numpy as jnp
from jax.experimental import pallas as pl
from jax.experimental.pallas import tpu as pltpu


def _hubert_ordinal_kernel(x_ref, w1_ref, b1_ref, w2_ref, b2_ref,
                           w3_ref, b3_ref, thr_ref, out_ref, feat_acc_ref,
                           *, t_true: int, ragged_time: bool):
    """Grid = (batch_blocks, time_blocks); time axis is a running reduction."""
    t_idx = pl.program_id(1)
    nt = pl.num_programs(1)
    bblk, tt, hdim = x_ref.shape
    p = w1_ref.shape[1]

    # Zero the per-batch-block feature accumulator on the first time step.
    @pl.when(t_idx == 0)
    def _():
        feat_acc_ref[...] = jnp.zeros_like(feat_acc_ref)

    # proj + ReLU for this (batch-block, time-chunk): one large MXU matmul with
    # M = Bblk*Tt rows.  x is streamed in its native dtype; cast to bf16 here.
    x2d = x_ref[...].astype(jnp.bfloat16).reshape(bblk * tt, hdim)
    h = jnp.dot(x2d, w1_ref[...],
                preferred_element_type=jnp.float32) + b1_ref[...]
    h = jnp.maximum(h, 0.0)
    h3 = h.reshape(bblk, tt, p)                                # (Bblk, Tt, P) f32

    if ragged_time:
        # Only the final (ragged) time chunk needs masking: its tail rows hold
        # unspecified VMEM contents (no wrapper zero-pad), so select them out
        # before accumulating.  Full chunks accumulate with a plain sum.
        @pl.when(t_idx < nt - 1)
        def _():
            feat_acc_ref[...] += jnp.sum(h3, axis=1)

        @pl.when(t_idx == nt - 1)
        def _():
            t_local = jax.lax.broadcasted_iota(jnp.int32, (bblk, tt, 1), 1)
            valid = (t_local + t_idx * tt) < t_true
            feat_acc_ref[...] += jnp.sum(jnp.where(valid, h3, 0.0), axis=1)
    else:
        feat_acc_ref[...] += jnp.sum(h3, axis=1)               # running time-sum

    # Epilogue on the last time step: mean over true T, shared_fc, threshold
    # subtraction -- batched over the whole batch block (2 small GEMMs total).
    @pl.when(t_idx == nt - 1)
    def _():
        feat = feat_acc_ref[...] * (1.0 / t_true)              # (Bblk, P) == mean_T
        h2 = jnp.dot(feat, w2_ref[...],
                     preferred_element_type=jnp.float32) + b2_ref[...]
        h2 = jnp.maximum(h2, 0.0)
        g = jnp.dot(h2, w3_ref[...],
                    preferred_element_type=jnp.float32) + b3_ref[...]   # (Bblk, 1)
        out_ref[...] = g - thr_ref[...]                        # (Bblk, K-1)


def _pick_batch_block(B: int, batch_block: int) -> int:
    """Return a divisor of B (or B itself); proper divisors are multiples of 8
    so the (Bblk, K-1) output block stays BlockSpec-legal without padding."""
    if B <= batch_block:
        # Split in two when legal so v7x's two TensorCores both get work.
        if B % 16 == 0:
            return B // 2
        return B
    for d in range(min(batch_block, B), 7, -1):
        if d % 8 == 0 and B % d == 0:
            return d
    return B   # fallback: single full-batch block (always legal)


def hubert_ordinal_forward(x, w1, b1, w2, b2, w3, b3, thresholds, *,
                           batch_block: int = 8, time_block: int | None = None):
    """x: (B, T, H).  Returns CORAL logits (B, K-1) float32.

    Dropout layers are identity (eval mode).  x is streamed in its native dtype
    (no wrapper cast/pad passes); the first matmul runs in bf16 on the MXU with
    f32 accumulation.
    """
    B, T, H = x.shape
    P = w1.shape[1]
    P2 = w2.shape[1]
    Km1 = thresholds.shape[0]
    x_item = jnp.dtype(x.dtype).itemsize

    # --- device-aware tile / VMEM budget --------------------------------------
    try:
        vmem_cap = int(pltpu.get_tpu_info().vmem_capacity_bytes)
    except Exception:
        vmem_cap = 64 * 1024 * 1024   # conservative (v7x-sized) fallback
    if time_block is None:
        time_block = 1024 if vmem_cap >= (96 << 20) else 512

    Bblk = _pick_batch_block(B, batch_block)
    grid_b = -(-B // Bblk)            # Bblk always divides B (or equals B)

    # Sublane alignment of the time tile: 16 rows for 2-byte x, 8 for f32.
    align = 16 if x_item == 2 else 8
    if T <= time_block:
        Tt = T                         # full-dim block: legal, no ragged chunk
    else:
        Tt = max(align, (time_block // align) * align)

    def ws_bytes(tt: int) -> int:
        return (2 * Bblk * tt * H * x_item        # double-buffered x stream
                + 2 * H * P * 2                    # W1 (bf16)
                + Bblk * tt * P * 4                # f32 h intermediate
                + Bblk * P * 4                     # feature accumulator scratch
                + 4 * (P * P2 + 2 * P2 + 2 + Km1 + Bblk * Km1 + P))

    budget = max(24 << 20, int(vmem_cap * 0.70))
    while Tt < T and Tt > align and ws_bytes(Tt) > budget:
        Tt = max(align, ((Tt // 2) // align) * align)

    grid_t = -(-T // Tt)
    ragged_time = (T % Tt) != 0

    vmem_limit = int(min(max(ws_bytes(Tt) + (16 << 20), 32 << 20),
                         vmem_cap - (8 << 20)))

    # --- tiny parameter preps (one-time, negligible) ---------------------------
    w1b = w1.astype(jnp.bfloat16)
    b1_2d = b1.reshape(1, P).astype(jnp.float32)
    b2_2d = b2.reshape(1, P2).astype(jnp.float32)
    b3_2d = b3.reshape(1, 1).astype(jnp.float32)
    thr_2d = thresholds.reshape(1, Km1).astype(jnp.float32)
    w2f = w2.astype(jnp.float32)
    w3f = w3.astype(jnp.float32)

    kernel = functools.partial(_hubert_ordinal_kernel,
                               t_true=T, ragged_time=ragged_time)

    const2d = lambda r, c: pl.BlockSpec((r, c), lambda b, t: (0, 0))

    out = pl.pallas_call(
        kernel,
        out_shape=jax.ShapeDtypeStruct((B, Km1), jnp.float32),
        grid_spec=pltpu.PrefetchScalarGridSpec(
            num_scalar_prefetch=0,
            grid=(grid_b, grid_t),
            in_specs=[
                pl.BlockSpec((Bblk, Tt, H), lambda b, t: (b, t, 0)),  # x stream
                const2d(H, P),      # W1 (bf16)
                const2d(1, P),      # b1
                const2d(P, P2),     # W2
                const2d(1, P2),     # b2
                const2d(P2, 1),     # W3
                const2d(1, 1),      # b3
                const2d(1, Km1),    # thresholds
            ],
            out_specs=pl.BlockSpec((Bblk, Km1), lambda b, t: (b, 0)),
            scratch_shapes=[pltpu.VMEM((Bblk, P), jnp.float32)],
        ),
        compiler_params=pltpu.CompilerParams(
            dimension_semantics=("parallel", "arbitrary"),
            vmem_limit_bytes=vmem_limit,
        ),
    )(x, w1b, b1_2d, w2f, b2_2d, w3f, b3_2d, thr_2d)

    return out


def logits_to_label(logits):
    """CORAL logits -> labels in [1, num_classes]."""
    probs = jax.nn.sigmoid(logits)
    return jnp.sum(probs > 0.5, axis=1) + 1


def reference_forward(x, w1, b1, w2, b2, w3, b3, thresholds):
    """Plain-JAX reference with the same bf16 rounding on the first matmul."""
    hp = jax.lax.Precision.HIGHEST
    xc = x.astype(jnp.bfloat16).astype(jnp.float32)
    w1c = w1.astype(jnp.bfloat16).astype(jnp.float32)
    h = jnp.maximum(jnp.einsum("bth,hp->btp", xc, w1c, precision=hp) + b1, 0.0)
    feat = jnp.mean(h, axis=1)
    h2 = jnp.maximum(jnp.dot(feat, w2, precision=hp) + b2, 0.0)
    g = jnp.dot(h2, w3, precision=hp) + b3
    return jnp.repeat(g, thresholds.shape[0], axis=1) - thresholds[None, :]


def _make_params(key, H, P, num_classes):
    P2, Km1 = P // 2, num_classes - 1
    k = jax.random.split(key, 7)
    w1 = jax.random.normal(k[0], (H, P), dtype=jnp.float32) * 0.1
    b1 = jax.random.normal(k[1], (P,), dtype=jnp.float32) * 0.1
    w2 = jax.random.normal(k[2], (P, P2), dtype=jnp.float32) * 0.1
    b2 = jax.random.normal(k[3], (P2,), dtype=jnp.float32) * 0.1
    w3 = jax.random.normal(k[4], (P2, 1), dtype=jnp.float32) * 0.1
    b3 = jax.random.normal(k[5], (1,), dtype=jnp.float32) * 0.1
    thr = jax.random.normal(k[6], (Km1,), dtype=jnp.float32) * 0.1
    return w1, b1, w2, b2, w3, b3, thr


if __name__ == "__main__":
    # TODO(synk): dropout layers are identity (eval mode); no RNG dropout in-kernel.
    key = jax.random.PRNGKey(0)
    kx1, kx2, kp = jax.random.split(key, 3)

    # Case 1: small shapes, ragged time path (T=12, time_block=8 -> 2 chunks,
    # last chunk masked in-kernel), single batch block (B=2).
    B, T, H = 2, 12, 32
    P, num_classes = 16, 9
    Km1 = num_classes - 1
    x = jax.random.normal(kx1, (B, T, H), dtype=jnp.float32)
    params = _make_params(kp, H, P, num_classes)

    logits = hubert_ordinal_forward(x, *params, batch_block=8, time_block=8)
    logits = jax.block_until_ready(logits)
    ref = reference_forward(x, *params)
    assert logits.shape == (B, Km1)
    assert jnp.allclose(logits, ref, atol=1e-3, rtol=1e-3), "mismatch (case 1)"
    labels = jax.block_until_ready(logits_to_label(logits))
    assert labels.shape == (B,)

    # Case 2: B=16 exercises the batch split (2 blocks of 8, megacore-friendly)
    # and the non-ragged full-time-block path.
    B2, T2 = 16, 16
    x2 = jax.random.normal(kx2, (B2, T2, H), dtype=jnp.float32)
    logits2 = hubert_ordinal_forward(x2, *params)
    logits2 = jax.block_until_ready(logits2)
    ref2 = reference_forward(x2, *params)
    assert logits2.shape == (B2, Km1)
    assert jnp.allclose(logits2, ref2, atol=1e-3, rtol=1e-3), "mismatch (case 2)"

    print("KERNEL_OK")
</pallas_src>

<mosaic_0001>
module attributes {stable_mosaic.version = 11 : i64} {
  func.func @_hubert_ordinal_kernel(%arg0: i32, %arg1: i32, %arg2: memref<2x8x32xf32, #tpu.memory_space<vmem>>, %arg3: memref<32x16xbf16, #tpu.memory_space<vmem>>, %arg4: memref<1x16xf32, #tpu.memory_space<vmem>>, %arg5: memref<16x8xf32, #tpu.memory_space<vmem>>, %arg6: memref<1x8xf32, #tpu.memory_space<vmem>>, %arg7: memref<8x1xf32, #tpu.memory_space<vmem>>, %arg8: memref<1x1xf32, #tpu.memory_space<vmem>>, %arg9: memref<1x8xf32, #tpu.memory_space<vmem>>, %arg10: memref<2x8xf32, #tpu.memory_space<vmem>>, %arg11: memref<2x16xf32, #tpu.memory_space<vmem>>) attributes {dimension_semantics = [#tpu.dimension_semantics<parallel>, #tpu.dimension_semantics<arbitrary>], iteration_bounds = array<i64: 1, 2>, scalar_prefetch = 0 : i64, scratch_operands = 1 : i64, tpu.core_type = #tpu.core_type<tc>, window_params = [{transform_indices = @transform_0, window_bounds = array<i64: 2, 8, 32>}, {pipeline_mode = #tpu.pipeline_mode<synchronous>, transform_indices = @transform_1, window_bounds = array<i64: 32, 16>}, {pipeline_mode = #tpu.pipeline_mode<synchronous>, transform_indices = @transform_2, window_bounds = array<i64: 1, 16>}, {pipeline_mode = #tpu.pipeline_mode<synchronous>, transform_indices = @transform_3, window_bounds = array<i64: 16, 8>}, {pipeline_mode = #tpu.pipeline_mode<synchronous>, transform_indices = @transform_4, window_bounds = array<i64: 1, 8>}, {pipeline_mode = #tpu.pipeline_mode<synchronous>, transform_indices = @transform_5, window_bounds = array<i64: 8, 1>}, {pipeline_mode = #tpu.pipeline_mode<synchronous>, transform_indices = @transform_6, window_bounds = array<i64: 1, 1>}, {pipeline_mode = #tpu.pipeline_mode<synchronous>, transform_indices = @transform_7, window_bounds = array<i64: 1, 8>}, {transform_indices = @transform_8, window_bounds = array<i64: 2, 8>}]} {
    %c0_i32 = arith.constant 0 : i32
    %0 = arith.cmpi eq, %arg1, %c0_i32 : i32
    %1 = arith.extui %0 : i1 to i32
    %c0_i32_0 = arith.constant 0 : i32
    %2 = arith.cmpi ne, %1, %c0_i32_0 : i32
    scf.if %2 {
      %cst_13 = arith.constant 0.000000e+00 : f32
      %23 = vector.broadcast %cst_13 : f32 to vector<2x16xf32>
      %c0_14 = arith.constant 0 : index
      %c0_15 = arith.constant 0 : index
      %24 = vector.load %arg11[%c0_14, %c0_15] : memref<2x16xf32, #tpu.memory_space<vmem>>, vector<2x16xf32>
      tpu.vector_store %arg11[%c0_14, %c0_15], %23 {strides = array<i32>} : memref<2x16xf32, #tpu.memory_space<vmem>>, vector<2x16xf32>,
    } else {
    }
    %c0 = arith.constant 0 : index
    %c0_1 = arith.constant 0 : index
    %c0_2 = arith.constant 0 : index
    %3 = vector.load %arg2[%c0, %c0_1, %c0_2] : memref<2x8x32xf32, #tpu.memory_space<vmem>>, vector<2x8x32xf32>
    %4 = arith.truncf %3 : vector<2x8x32xf32> to vector<2x8x32xbf16>
    %5 = vector.shape_cast %4 : vector<2x8x32xbf16> to vector<16x32xbf16>
    %c0_3 = arith.constant 0 : index
    %c0_4 = arith.constant 0 : index
    %6 = vector.load %arg3[%c0_3, %c0_4] : memref<32x16xbf16, #tpu.memory_space<vmem>>, vector<32x16xbf16>
    %cst = arith.constant dense<0.000000e+00> : vector<16x16xf32>
    %7 = tpu.matmul %5, %6, %cst {dimension_numbers = #tpu.dot_dimension_numbers<[1], [0], [0], [1], [0, 0, 1, 1], [], []>} : vector<16x32xbf16>, vector<32x16xbf16>, vector<16x16xf32> -> vector<16x16xf32>
    %c0_5 = arith.constant 0 : index
    %c0_6 = arith.constant 0 : index
    %8 = vector.load %arg4[%c0_5, %c0_6] : memref<1x16xf32, #tpu.memory_space<vmem>>, vector<1x16xf32>
    %9 = vector.broadcast %8 : vector<1x16xf32> to vector<16x16xf32>
    %10 = arith.addf %7, %9 : vector<16x16xf32>
    %cst_7 = arith.constant 0.000000e+00 : f32
    %11 = vector.broadcast %cst_7 : f32 to vector<16x16xf32>
    %12 = arith.maximumf %10, %11 : vector<16x16xf32>
    %13 = vector.shape_cast %12 : vector<16x16xf32> to vector<2x8x16xf32>
    %c1_i32 = arith.constant 1 : i32
    %14 = arith.cmpi slt, %arg1, %c1_i32 : i32
    %15 = arith.extui %14 : i1 to i32
    %c0_i32_8 = arith.constant 0 : i32
    %16 = arith.cmpi ne, %15, %c0_i32_8 : i32
    scf.if %16 {
      %c0_13 = arith.constant 0 : index
      %c0_14 = arith.constant 0 : index
      %23 = vector.load %arg11[%c0_13, %c0_14] : memref<2x16xf32, #tpu.memory_space<vmem>>, vector<2x16xf32>
      %cst_15 = arith.constant dense<0.000000e+00> : vector<2x16xf32>
      %24 = vector.multi_reduction <add>, %13, %cst_15 [1] : vector<2x8x16xf32> to vector<2x16xf32>
      %25 = arith.addf %23, %24 : vector<2x16xf32>
      %c0_16 = arith.constant 0 : index
      %c0_17 = arith.constant 0 : index
      %26 = vector.load %arg11[%c0_16, %c0_17] : memref<2x16xf32, #tpu.memory_space<vmem>>, vector<2x16xf32>
      tpu.vector_store %arg11[%c0_16, %c0_17], %25 {strides = array<i32>} : memref<2x16xf32, #tpu.memory_space<vmem>>, vector<2x16xf32>,
    } else {
    }
    %c1_i32_9 = arith.constant 1 : i32
    %17 = arith.cmpi eq, %arg1, %c1_i32_9 : i32
    %18 = arith.extui %17 : i1 to i32
    %c0_i32_10 = arith.constant 0 : i32
    %19 = arith.cmpi ne, %18, %c0_i32_10 : i32
    scf.if %19 {
      %23 = tpu.iota {dimensions = array<i32: 1>} : vector<2x8x1xi32>
      %c8_i32 = arith.constant 8 : i32
      %24 = arith.muli %arg1, %c8_i32 : i32
      %25 = vector.broadcast %24 : i32 to vector<2x8x1xi32>
      %26 = arith.addi %23, %25 : vector<2x8x1xi32>
      %c12_i32 = arith.constant 12 : i32
      %27 = vector.broadcast %c12_i32 : i32 to vector<2x8x1xi32>
      %28 = arith.cmpi slt, %26, %27 : vector<2x8x1xi32>
      %c0_13 = arith.constant 0 : index
      %c0_14 = arith.constant 0 : index
      %29 = vector.load %arg11[%c0_13, %c0_14] : memref<2x16xf32, #tpu.memory_space<vmem>>, vector<2x16xf32>
      %cst_15 = arith.constant 0.000000e+00 : f32
      %30 = vector.shape_cast %28 : vector<2x8x1xi1> to vector<2x8x1xi1>
      %31 = vector.broadcast %30 : vector<2x8x1xi1> to vector<2x8x16xi1>
      %32 = vector.broadcast %cst_15 : f32 to vector<2x8x16xf32>
      %33 = arith.select %31, %13, %32 : vector<2x8x16xi1>, vector<2x8x16xf32>
      %cst_16 = arith.constant dense<0.000000e+00> : vector<2x16xf32>
      %34 = vector.multi_reduction <add>, %33, %cst_16 [1] : vector<2x8x16xf32> to vector<2x16xf32>
      %35 = arith.addf %29, %34 : vector<2x16xf32>
      %c0_17 = arith.constant 0 : index
      %c0_18 = arith.constant 0 : index
      %36 = vector.load %arg11[%c0_17, %c0_18] : memref<2x16xf32, #tpu.memory_space<vmem>>, vector<2x16xf32>
      tpu.vector_store %arg11[%c0_17, %c0_18], %35 {strides = array<i32>} : memref<2x16xf32, #tpu.memory_space<vmem>>, vector<2x16xf32>,
    } else {
    }
    %c1_i32_11 = arith.constant 1 : i32
    %20 = arith.cmpi eq, %arg1, %c1_i32_11 : i32
    %21 = arith.extui %20 : i1 to i32
    %c0_i32_12 = arith.constant 0 : i32
    %22 = arith.cmpi ne, %21, %c0_i32_12 : i32
    scf.if %22 {
      %c0_13 = arith.constant 0 : index
      %c0_14 = arith.constant 0 : index
      %23 = vector.load %arg11[%c0_13, %c0_14] : memref<2x16xf32, #tpu.memory_space<vmem>>, vector<2x16xf32>
      %cst_15 = arith.constant 0.0833333358 : f32
      %24 = vector.broadcast %cst_15 : f32 to vector<2x16xf32>
      %25 = arith.mulf %23, %24 : vector<2x16xf32>
      %c0_16 = arith.constant 0 : index
      %c0_17 = arith.constant 0 : index
      %26 = vector.load %arg5[%c0_16, %c0_17] : memref<16x8xf32, #tpu.memory_space<vmem>>, vector<16x8xf32>
      %cst_18 = arith.constant dense<0.000000e+00> : vector<2x8xf32>
      %27 = tpu.matmul %25, %26, %cst_18 {dimension_numbers = #tpu.dot_dimension_numbers<[1], [0], [0], [1], [0, 0, 1, 1], [], []>} : vector<2x16xf32>, vector<16x8xf32>, vector<2x8xf32> -> vector<2x8xf32>
      %c0_19 = arith.constant 0 : index
      %c0_20 = arith.constant 0 : index
      %28 = vector.load %arg6[%c0_19, %c0_20] : memref<1x8xf32, #tpu.memory_space<vmem>>, vector<1x8xf32>
      %29 = vector.broadcast %28 : vector<1x8xf32> to vector<2x8xf32>
      %30 = arith.addf %27, %29 : vector<2x8xf32>
      %cst_21 = arith.constant 0.000000e+00 : f32
      %31 = vector.broadcast %cst_21 : f32 to vector<2x8xf32>
      %32 = arith.maximumf %30, %31 : vector<2x8xf32>
      %c0_22 = arith.constant 0 : index
      %c0_23 = arith.constant 0 : index
      %33 = vector.load %arg7[%c0_22, %c0_23] : memref<8x1xf32, #tpu.memory_space<vmem>>, vector<8x1xf32>
      %cst_24 = arith.constant dense<0.000000e+00> : vector<2x1xf32>
      %34 = tpu.matmul %32, %33, %cst_24 {dimension_numbers = #tpu.dot_dimension_numbers<[1], [0], [0], [1], [0, 0, 1, 1], [], []>} : vector<2x8xf32>, vector<8x1xf32>, vector<2x1xf32> -> vector<2x1xf32>
      %c0_25 = arith.constant 0 : index
      %c0_26 = arith.constant 0 : index
      %35 = vector.load %arg8[%c0_25, %c0_26] : memref<1x1xf32, #tpu.memory_space<vmem>>, vector<1x1xf32>
      %36 = vector.broadcast %35 : vector<1x1xf32> to vector<2x1xf32>
      %37 = arith.addf %34, %36 : vector<2x1xf32>
      %c0_27 = arith.constant 0 : index
      %c0_28 = arith.constant 0 : index
      %38 = vector.load %arg9[%c0_27, %c0_28] : memref<1x8xf32, #tpu.memory_space<vmem>>, vector<1x8xf32>
      %39 = vector.broadcast %37 : vector<2x1xf32> to vector<2x8xf32>
      %40 = vector.broadcast %38 : vector<1x8xf32> to vector<2x8xf32>
      %41 = arith.subf %39, %40 : vector<2x8xf32>
      %c0_29 = arith.constant 0 : index
      %c0_30 = arith.constant 0 : index
      %42 = vector.load %arg10[%c0_29, %c0_30] : memref<2x8xf32, #tpu.memory_space<vmem>>, vector<2x8xf32>
      tpu.vector_store %arg10[%c0_29, %c0_30], %41 {strides = array<i32>} : memref<2x8xf32, #tpu.memory_space<vmem>>, vector<2x8xf32>,
    } else {
    }
    return
  }
  func.func @transform_0(%arg0: i32, %arg1: i32) -> (i32, i32, i32) {
    %c0_i32 = arith.constant 0 : i32
    %c0_i32_0 = arith.constant 0 : i32
    return %arg0, %arg1, %c0_i32 : i32, i32, i32
  }
  func.func @transform_1(%arg0: i32, %arg1: i32) -> (i32, i32) {
    %c0_i32 = arith.constant 0 : i32
    %c0_i32_0 = arith.constant 0 : i32
    %c0_i32_1 = arith.constant 0 : i32
    return %c0_i32, %c0_i32_0 : i32, i32
  }
  func.func @transform_2(%arg0: i32, %arg1: i32) -> (i32, i32) {
    %c0_i32 = arith.constant 0 : i32
    %c0_i32_0 = arith.constant 0 : i32
    %c0_i32_1 = arith.constant 0 : i32
    return %c0_i32, %c0_i32_0 : i32, i32
  }
  func.func @transform_3(%arg0: i32, %arg1: i32) -> (i32, i32) {
    %c0_i32 = arith.constant 0 : i32
    %c0_i32_0 = arith.constant 0 : i32
    %c0_i32_1 = arith.constant 0 : i32
    return %c0_i32, %c0_i32_0 : i32, i32
  }
  func.func @transform_4(%arg0: i32, %arg1: i32) -> (i32, i32) {
    %c0_i32 = arith.constant 0 : i32
    %c0_i32_0 = arith.constant 0 : i32
    %c0_i32_1 = arith.constant 0 : i32
    return %c0_i32, %c0_i32_0 : i32, i32
  }
  func.func @transform_5(%arg0: i32, %arg1: i32) -> (i32, i32) {
    %c0_i32 = arith.constant 0 : i32
    %c0_i32_0 = arith.constant 0 : i32
    %c0_i32_1 = arith.constant 0 : i32
    return %c0_i32, %c0_i32_0 : i32, i32
  }
  func.func @transform_6(%arg0: i32, %arg1: i32) -> (i32, i32) {
    %c0_i32 = arith.constant 0 : i32
    %c0_i32_0 = arith.constant 0 : i32
    %c0_i32_1 = arith.constant 0 : i32
    return %c0_i32, %c0_i32_0 : i32, i32
  }
  func.func @transform_7(%arg0: i32, %arg1: i32) -> (i32, i32) {
    %c0_i32 = arith.constant 0 : i32
    %c0_i32_0 = arith.constant 0 : i32
    %c0_i32_1 = arith.constant 0 : i32
    return %c0_i32, %c0_i32_0 : i32, i32
  }
  func.func @transform_8(%arg0: i32, %arg1: i32) -> (i32, i32) {
    %c0_i32 = arith.constant 0 : i32
    %c0_i32_0 = arith.constant 0 : i32
    return %arg0, %c0_i32 : i32, i32
  }
}

</mosaic_0001>

<bundles_post_ra>
// kernel: tpu_custom_call.1
= control target key start
LH: loop header
LB: loop body
LE: loop exit
PB: predicated region body
PF: predicated region fallthrough
CT: control target
= control target key end

     0   :  { %s1117_s0 = inlined_call_operand.vmem [shape: f32[2,12,32], index: 0, kind: input, shape index: {}]   ;;  %s1118_s1 = inlined_call_operand.vmem [shape: bf16[32,16], index: 1, kind: input, shape index: {}]   ;;  %s1119_s2 = inlined_call_operand.vmem [shape: f32[1,16], index: 2, kind: input, shape index: {}]   ;;  %s1120_s3 = inlined_call_operand.vmem [shape: f32[16,8], index: 3, kind: input, shape index: {}]   ;;  %s1121_s4 = inlined_call_operand.vmem [shape: f32[1,8], index: 4, kind: input, shape index: {}]   ;;  %s1122_s5 = inlined_call_operand.vmem [shape: f32[8,1], index: 5, kind: input, shape index: {}]   ;;  %s1123_s6 = inlined_call_operand.<no memory space> [shape: f32[1,1], index: 6, kind: input, shape index: {}]   ;;  %s1124_s7 = inlined_call_operand.vmem [shape: f32[1,8], index: 7, kind: input, shape index: {}]   ;;  %s1125_s8 = inlined_call_operand.hbm [shape: f32[2,8], index: 8, kind: output, shape index: {}]  }
   0x1   :  { %v13_v0 = vstv %s1123_s6 }
   0x2   :  { %14 = vst [vmem:[#allocation3] sm:$0x1] %v13_v0 }
   0x3   :  { %15 = vsyncpa [#allocation6], 0  ;;  %s996_s29 = smov 0   ;;  %s998_s30 = smov 0  }
   0x4   :  { %s1000_s9 = smov 0   ;;  %s1002_s10 = smov 0  }
   0x5   :  { %s1004_s11 = smov 0  }
   0x6 LB: > { %s756_s6 = sadd.s32 4294967295, %s938_s11   ;;  %s30_s12 = sadd.s32 1, %s934_s10  ;;  %s938_s11 = sphi %s1004_s11, %s21_s11   ;;  %s934_s10 = sphi %s1002_s10, %s1130_s10   ;;  %s930_s9 = sphi %s1000_s9, %s1129_s9   ;;  %s926_s30 = sphi %s998_s30, %s1128_s30   ;;  %s922_s29 = sphi %s996_s29, %s1127_s29  }
   0x7   : > { %p31_p0 = scmp.ge.s32.totalorder %s30_s12, 2  ;;  %p49_p1 = scmp.ne.s32.totalorder %s926_s30, %s922_s29 }
   0x8   : > { %p50_p2 = scmp.eq.s32.totalorder %s938_s11, 0  ;;  %s42_s14 = sadd.s32 1, %s926_s30 }
   0x9   : > { %s1132_s12 = smov (%p31_p0, %s30_s12), 0  ;;  %p758_p5 = scmp.ge.s32.totalorder %s938_s11, 2 }
   0xa   : > { %p51_p3 = por %p50_p2, %p49_p1  ;;  %s38_s13 = ssub.s32 %s934_s10, %s1132_s12 }
   0xb   : > { %p40_p4 = scmp.eq.s32.totalorder %s38_s13, 0  ;;  %269 = sbr.rel (%p758_p5) target bundleno = 25 (0x19), region = 44 }
   0xd   : > { %s1032_s15 = scalar_select %p40_p4, %s926_s30, %s42_s14  }
  0x12   : > { %272 = sbr.rel (!%p51_p3) target bundleno = 25 (0x19), region = 48  ;;  %s274_s16 = sand.u32 (%p51_p3), 1, %s926_s30  }
  0x13   : > { %s760_s17 = sshll.u32 (%p51_p3), %s934_s10, 3  ;;  %s759_s18 = sshll.u32 (%p51_p3), %s274_s16, 4 }
  0x14   : > { %s281_s21 = scalar_lea.vmem (%p51_p3), %s1117_s0, %s760_s17  ;;  %s276_s22 = scalar_lea.vmem (%p51_p3), [#allocation4], %s759_s18 }
  0x15   : > { %v311_v1 = vld [vmem:[%s281_s21] sm:$0xff] (%p51_p3)  ;;  %v313_v2 = vld [vmem:[%s281_s21 + $0x10] sm:$0xff] (%p51_p3) }
  0x16   : > { %312 = vst [vmem:[%s276_s22] sm:$0xff] (%p51_p3), %v311_v1  ;;  %314 = vst [vmem:[%s276_s22 + $0x8] sm:$0xff] (%p51_p3), %v313_v2 }
  0x19 PF: > { %p761_p6 = scmp.ge.s32.totalorder %s938_s11, 1  ;;  %p319_p7 = scmp.lt.s32.totalorder %s938_s11, 3 }
  0x1b   : > { %p320_p8 = pnand %p761_p6, %p319_p7 }
  0x1c   : > { %s326_s23 = sand.u32 (!%p320_p8), 1, %s922_s29   ;;  %p763_p9 = scmp.ne.s32.totalorder (!%p320_p8), %s930_s9, 0 }
  0x1d   : > { %323 = sbr.rel (%p320_p8) target bundleno = 908 (0x38c), region = 86  ;;  %s762_s24 = sshll.u32 (!%p320_p8), %s326_s23, 4 }
  0x1e   : > { %s328_s25 = scalar_lea.vmem (!%p320_p8), [#allocation4], %s762_s24 }
  0x24   : > { %359 = sbr.rel (%p763_p9) target bundleno = 43 (0x2b), region = 94  ;;  %vm360_vm0 = vcmask (!%p763_p9), 123904   ;;  %v940_v3 = vmov (!%p763_p9), 0.0  }
  0x25   : > { %361 = vst.msk [vmem:[#allocation2] sm:$0x3] (!%p763_p9), %vm360_vm0, %v940_v3 }
  0x2b PF: > { %v867_v4 = vld [vmem:[%s1118_s1] sm:$0xff]   ;;  %v941_v5 = vmov 0.0   ;;  %v868_v6 = vld [vmem:[%s1118_s1 + $0x8] sm:$0xff]   ;;  %vm942_vm1 = vmmov 0   ;;  %vm394_vm2 = vcmask 261120   ;;  %p769_p10 = scmp.ge.s32.totalorder %s930_s9, 1 }
  0x2c   : > { %790 = vmatprep.subr.bf16.mxu0 %v941_v5  ;;  %794 = vmatprep.mubr.msk.bf16.mxu0 %vm942_vm1, %v941_v5  ;;  %v362_v7 = vld [vmem:[%s328_s25] sm:$0xff]  ;;  %v363_v8 = vld [vmem:[%s328_s25 + $0x8] sm:$0xff]  ;;  %vm446_vm3 = vcmask (!%p769_p10), 130048   ;;  %vm463_vm4 = vcmask (!%p769_p10), 1041409   ;;  %vm467_vm5 = vcmask (!%p769_p10), 123904  }
  0x2d   : > { %791 = vmatpush3.bf16.msra.mxu0 %v867_v4  ;;  %v781_v9 = vpack.c.bf16 %v363_v8, %v362_v7  ;;  %v764_v10 = vld [vmem:[%s1119_s2] ss:$0 sm:$0xff] }
  0x2e   : > { %792 = vmatprep.subr.bf16.mxu0 %v941_v5  ;;  %v445_v31 = vld [vmem:[#allocation2] sm:$0x3] (!%p769_p10) }
  0x31   : > { %793 = vmatpush3.bf16.msra.mxu0 %v868_v6 }
  0x34   : > { %795 = vmatmul.mubr.msk.bf16.vlgmr.msra.gmra.mrb[0].mxu0 %vm394_vm2, %v781_v9 }
 0x106   : > { %444 = sbr.rel (%p769_p10) target bundleno = 287 (0x11f), region = 98 }
 0x107   : > { %v432_v11 = vpop.f32.mrb[0].mxu0 }
 0x108   : > { %v433_v12 = vadd.f32 %v764_v10, %v432_v11  ;;  %v796_v13 = vpop.f32.mrb[1].mxu0 }
 0x109   : > { %v435_v14 = vpop.f32.mrb[2].mxu0 }
 0x10a   : > { %v439_v15 = vmax.f32 %v433_v12, 0.0  ;;  %v436_v16 = vadd.f32 %v764_v10, %v435_v14  ;;  %v797_v17 = vpop.f32.mrb[3].mxu0 }
 0x10c   : > { %v440_v18 = vmax.f32 %v436_v16, 0.0  ;;  %v447_v19 = vsel (!%p769_p10), %vm446_vm3, %v439_v15, 0.0 }
 0x10d   : > { %v448_v21 = vrot.slane %v447_v19, 4 }
 0x10e   : > { %v454_v20 = vsel %vm446_vm3, %v440_v18, 0.0 }
 0x10f   : > { %v455_v22 = vrot.slane %v454_v20, 4  ;;  %v449_v23 = vadd.f32 %v448_v21, %v447_v19 }
 0x111   : > { %v456_v24 = vadd.f32 %v455_v22, %v454_v20  ;;  %v450_v25 = vrot.slane %v449_v23, 2 }
 0x113   : > { %v457_v26 = vrot.slane %v456_v24, 2  ;;  %v451_v27 = vadd.f32 %v450_v25, %v449_v23 }
 0x115   : > { %v458_v28 = vadd.f32 %v457_v26, %v456_v24  ;;  %v452_v29 = vrot.slane %v451_v27, 1 }
 0x117   : > { %v459_v30 = vrot.slane %v458_v28, 1  ;;  %v453_v32 = vadd.f32 %v452_v29, %v451_v27 }
 0x119   : > { %v460_v33 = vadd.f32 %v459_v30, %v458_v28 }
 0x11b   : > { %v464_v34 = vsel %vm463_vm4, %v460_v33, %v453_v32 }
 0x11c   : > { %v466_v35 = vadd.f32 %v464_v34, %v445_v31 }
 0x11e   : > { %468 = vst.msk [vmem:[#allocation2] sm:$0x3] %vm467_vm5, %v466_v35 }
 0x11f PF: > { %p770_p11 = scmp.ne.s32.totalorder %s930_s9, 1 }
 0x120   : > { %v509_v36 = vld [vmem:[%s1120_s3] sm:$0xff] (!%p770_p11)  ;;  %v510_v37 = vld [vmem:[%s1120_s3 + $0x8] sm:$0xff] (!%p770_p11)  ;;  %v473_v38 = vlaneseq (!%p770_p11)  ;;  %s771_s20 = sshll.u32 (!%p770_p11), %s930_s9, 3  ;;  %v943_v39 = vmov (!%p770_p11), 0.0|0.0   ;;  %vm944_vm6 = vmmov (!%p770_p11), 0   ;;  %v945_v41 = vmov (!%p770_p11), 0.0  }
 0x121   : > { %472 = sbr.rel (%p770_p11) target bundleno = 883 (0x373), region = 102  ;;  %810 = vmatprep.subr.bf16.mxu0 (!%p770_p11), %v943_v39  ;;  %v811_v40 = vpack.c.bf16 (!%p770_p11), %v510_v37, %v509_v36  ;;  %802 = vmatprep.mubr.msk.f32.mxu0 (!%p770_p11), %vm944_vm6, %v945_v41  ;;  %v476_v42 = vstv (!%p770_p11), %s771_s20  ;;  %vm484_vm7 = vcmask (!%p770_p11), 130048   ;;  %vm501_vm9 = vcmask (!%p770_p11), 1041409   ;;  %v592_v2 = vld [vmem:[%s1122_s5] sm:$0xff] (!%p770_p11) }
 0x122   : > { %v474_v43 = vshrl.u32 (!%p770_p11), %v473_v38, 7  ;;  %805 = vmatprep.subr.mxu1 (!%p770_p11), %v945_v41  ;;  %807 = vmatprep.mubr.msk.f32.mxu1 (!%p770_p11), %vm944_vm6, %v945_v41  ;;  %vm505_vm10 = vcmask (!%p770_p11), 123904   ;;  %v772_v3 = vld [vmem:[%s1121_s4] ss:$0 sm:$0xff] (!%p770_p11)  ;;  %vm600_vm11 = vcmask (!%p770_p11), 64512   ;;  %v946_v8 = vmov (!%p770_p11), 0  }
 0x123   : > { %812 = vmatpush3.bf16.msra.mxu0 (!%p770_p11), %v811_v40  ;;  %806 = vmatpush3.msra.mxu1 (!%p770_p11), %v592_v2  ;;  %v774_v9 = vld [vmem:[#allocation3] ss:$0 sm:$0xff] (!%p770_p11)  ;;  %v776_v13 = vld [vmem:[%s1124_s7] ss:$0 sm:$0xff] (!%p770_p11)  ;;  %vm687_vm12 = vcmask (!%p770_p11), 58368  }
 0x124   : > { %v477_v44 = vadd.s32 (!%p770_p11), %v476_v42, %v474_v43  ;;  %869 = vset.pattern.permute.xlu0 (!%p770_p11), %v946_v8 }
 0x125   : > { %v479_v59 = vld [vmem:[#allocation2] sm:$0x3] (!%p770_p11) }
 0x126   : > { %vm478_vm8 = vcmp.lt.s32.totalorder (!%p770_p11), %v477_v44, 12 }
 0x127   : > { %v482_v45 = vsel (!%p770_p11), %vm478_vm8, %v439_v15, 0.0  ;;  %v483_v46 = vsel (!%p770_p11), %vm478_vm8, %v440_v18, 0.0 }
 0x128   : > { %v485_v47 = vsel %vm484_vm7, %v482_v45, 0.0  ;;  %v492_v48 = vsel %vm484_vm7, %v483_v46, 0.0 }
 0x129   : > { %v486_v49 = vrot.slane %v485_v47, 4  ;;  %v493_v50 = vrot.slane %v492_v48, 4 }
 0x12b   : > { %v487_v51 = vadd.f32 %v486_v49, %v485_v47  ;;  %v494_v52 = vadd.f32 %v493_v50, %v492_v48 }
 0x12d   : > { %v488_v53 = vrot.slane %v487_v51, 2  ;;  %v495_v54 = vrot.slane %v494_v52, 2 }
 0x12f   : > { %v489_v55 = vadd.f32 %v488_v53, %v487_v51  ;;  %v496_v56 = vadd.f32 %v495_v54, %v494_v52 }
 0x131   : > { %v490_v57 = vrot.slane %v489_v55, 1  ;;  %v497_v58 = vrot.slane %v496_v56, 1 }
 0x133   : > { %v491_v60 = vadd.f32 %v490_v57, %v489_v55  ;;  %v498_v61 = vadd.f32 %v497_v58, %v496_v56 }
 0x135   : > { %v502_v62 = vsel %vm501_vm9, %v498_v61, %v491_v60 }
 0x136   : > { %v504_v63 = vadd.f32 %v502_v62, %v479_v59 }
 0x138   : > { %506 = vst.msk [vmem:[#allocation2] sm:$0x3] %vm505_vm10, %v504_v63 }
 0x13f   : > { %v507_v0 = vld [vmem:[#allocation2] sm:$0x3] }
 0x140   : > { %v508_v1 = vmul.f32 0.083333336, %v507_v0 }
 0x142   : > { %803 = vmatmul.mubr.msk.f32.vlgmr.msra.gmra.mrb[0].mxu0 %vm484_vm7, %v508_v1 }
 0x215   : > { %v587_v4 = vpop.f32.mrb[0].mxu0 }
 0x216   : > { %v588_v5 = vadd.f32 %v772_v3, %v587_v4  ;;  %v804_v6 = vpop.f32.mrb[1].mxu0 }
 0x218   : > { %v591_v7 = vmax.f32 %v588_v5, 0.0 }
 0x21a   : > { %808 = vmatmul.mubr.msk.f32.vlgmr.msra.gmra.mrb[0].mxu1 %vm600_vm11, %v591_v7 }
 0x2ed   : > { %v670_v10 = vpop.f32.mrb[0].mxu1 }
 0x2ee   : > { %v671_v11 = vadd.f32 %v774_v9, %v670_v10  ;;  %v809_v12 = vpop.f32.mrb[1].mxu1 }
 0x2f0   : > { %677 = vperm.xlu0 %869, %v671_v11  }
 0x36f   : > { %v678_v14 = vpop.permute.xlu0 %677 }
 0x370   : > { %v686_v15 = vsub.f32 %v678_v14, %v776_v13 }
 0x372   : > { %688 = vst.msk [vmem:[#allocation5] sm:$0x3] %vm687_vm12, %v686_v15 }
 0x373 PF: > { %p1076_p12 = scmp.eq.s32.totalorder %s756_s6, 1  ;;  %s947_s27 = smov [#allocation5]  }
 0x374   : > { %s698_s28 = sshll.u32 %s947_s27, 4  ;;  %s699_s28 = int_to_ptr.vmem [resolvable:$true] %s698_s28 }
 0x375   : > { %s870_s13 = scalar_lea.vmem %s699_s28, 32  ;;  %p877_p2 = scmp.lt.s32.totalorder %s699_s28, %s699_s28 }
 0x376   : > { %p871_p13 = scmp.ne.s32.totalorder %s699_s28, %s870_s13  ;;  %p878_p3 = scmp.lt.s32.totalorder %s870_s13, %s870_s13 }
 0x378   : > { %p872_p0 = pnand %p871_p13, %p1076_p12  ;;  %p879_p4 = por %p878_p3, %p877_p2 }
 0x37a   : > { %p873_p1 = pneg %p872_p0 }
 0x37c   : > { %p880_p5 = pnand %p879_p4, %p873_p1 }
 0x37e   : > { %883 = shalt.err (!%p880_p5)
}
 0x37f   : > { %s884_s6 = scalar_lea.hbm %s1125_s8, 32 }
 0x380   : > { %p885_p6 = scmp.ne.s32.totalorder %s1125_s8, %s884_s6  ;;  %p890_p9 = scmp.lt.u32.totalorder %s884_s6, %s1125_s8 }
 0x382   : > { %p886_p7 = pnand %p885_p6, %p1076_p12 }
 0x384   : > { %p887_p8 = pneg %p886_p7 }
 0x386   : > { %p892_p10 = pnand %p890_p9, %p887_p8 }
 0x388   : > { %895 = shalt.err (!%p892_p10)
}
 0x389   : > { %814 = dma.vmem_to_hbm [thread:$0]  (%p1076_p12), %s699_s28, 32, %s1125_s8, [#allocation6]  }
 0x38a   : > { %917 = dma.done.wait (%p1076_p12), [#allocation6], 32  }
 0x38b   : > { %919 = vsyncadd (%p1076_p12), [#allocation6], 4294967264 }
 0x38c PF: > { %s21_s11 = sadd.s32 1, %s938_s11   ;;  %s1127_s29 = smov %s926_s30 }
 0x38d   : > { %p18_p11 = scmp.ge.s32.totalorder %s21_s11, 4   ;;  %s1128_s30 = smov %s1032_s15 }
 0x38e   : > { %s1129_s9 = smov %s934_s10  ;;  %s1130_s10 = smov %s1132_s12 }
 0x38f   :  { %20 = sbr.rel (!%p18_p11) target bundleno = 6 (0x6), region = 135 }
 0x396   :  { %711 = vsyncpa [#allocation6], 1 }
 0x397   :  { %713 = vsyncpa [#allocation6 + $0x1], 1 }

</bundles_post_ra>
